<compile_context>
chip_gen: v5e
topology: v5e:2x2
jax: 0.10.0
libtpu: 0.0.40
codegen_flags: <defaults>
</compile_context>

<pallas_src>
import math
from functools import partial

import numpy as np
import jax
import jax.numpy as jnp
from jax.experimental import pallas as pl
from jax.experimental.pallas import tpu as pltpu


def _pair_selection_constants(episode, way, shot):
    """One-hot gather matrices for the pairwise features and the group-mean matrix.

    Flat pair index r = e*N*N + i*N + j with N = way*shot:
      t1 half uses encoder row (e, i)  [i = a*shot + s1]
      t2 half uses encoder row (e, j)  [j = b*shot + s2]
      group of r is (e, a) = (e, i // shot)  -> matches torch's
      reshape(E, way, way*shot*shot, 2H).mean(dim=2) grouping (mean is
      permutation-invariant within a group).
    """
    N = way * shot
    M = episode * N
    GR = episode * N * N
    G = episode * way
    R = way * shot * shot

    r = np.arange(GR)
    e = r // (N * N)
    i = (r // N) % N
    j = r % N

    s1 = np.zeros((GR, M), np.float32)
    s2 = np.zeros((GR, M), np.float32)
    s1[r, e * N + i] = 1.0
    s2[r, e * N + j] = 1.0

    grp = e * way + (i // shot)
    avg = np.zeros((G, GR), np.float32)
    avg[grp, r] = 1.0 / R
    return jnp.asarray(s1), jnp.asarray(s2), jnp.asarray(avg)


def make_encoder_kernel(hid_dim):
    eps = 1e-20

    def kernel(x_ref, wenc_ref, benc_ref, w1a_ref, w1b_ref, w2_ref, w3_ref,
               s1_ref, s2_ref, avg_ref, z_ref, latent_ref, kl_ref):
        f32 = jnp.float32
        # dropout(p=0) is the identity; encoder linear.
        out = jnp.dot(x_ref[...], wenc_ref[...],
                      preferred_element_type=f32) + benc_ref[...]       # (M, H)

        # Relation layer 1 with the concat eliminated algebraically:
        #   concat(t1, t2) @ W1 == t1 @ W1[:H] + t2 @ W1[H:]
        p = jnp.dot(out, w1a_ref[...], preferred_element_type=f32)       # (M, 2H)
        q = jnp.dot(out, w1b_ref[...], preferred_element_type=f32)       # (M, 2H)
        h = jnp.maximum(
            jnp.dot(s1_ref[...], p, preferred_element_type=f32)
            + jnp.dot(s2_ref[...], q, preferred_element_type=f32), 0.0)  # (G*R, 2H)

        # Relation layers 2 & 3 over all G*R pairs at once.
        h = jnp.maximum(jnp.dot(h, w2_ref[...], preferred_element_type=f32), 0.0)
        h = jnp.maximum(jnp.dot(h, w3_ref[...], preferred_element_type=f32), 0.0)

        # Per-(episode, way) mean over its way*shot*shot pairs -> lane-dense (G, 2H).
        stats = jnp.dot(avg_ref[...], h, preferred_element_type=f32)

        mean = stats[:, :hid_dim]
        var = stats[:, hid_dim:]
        latent = mean + var * z_ref[...]
        latent_ref[...] = latent

        # KL(q || N(0,1)) per element, then mean over everything.
        # f32-exact simplifications: log(1+eps)=0, x/(1+eps)=x, 0.5*log(2*pi) cancels.
        diff = (latent - mean) / (var + eps)
        kl_elem = -0.5 * diff * diff - jnp.log(var + eps) + 0.5 * latent * latent
        kl_ref[...] = jnp.mean(kl_elem)[None, None]

    return kernel


@partial(jax.jit, static_argnames=("way_num", "shot_num", "feat_dim", "hid_dim"))
def encoder_forward(x, params, z, *, way_num, shot_num, feat_dim, hid_dim):
    """Replicates Encoder.forward.  z is the N(0,1) noise used by sample()."""
    E = x.shape[0]
    N = way_num * shot_num
    M = E * N
    H = hid_dim
    G = E * way_num
    GR = E * N * N

    x2d = x.reshape(M, feat_dim)
    z2d = z.reshape(G, H)
    s1, s2, avg = _pair_selection_constants(E, way_num, shot_num)

    # Split the first relation weight outside the kernel (free XLA slices).
    w1a = params["w_r1"][:H, :]
    w1b = params["w_r1"][H:, :]

    latent2d, kl = pl.pallas_call(
        make_encoder_kernel(H),
        out_shape=(
            jax.ShapeDtypeStruct((G, H), jnp.float32),
            jax.ShapeDtypeStruct((1, 1), jnp.float32),
        ),
        grid=(1,),
        in_specs=[
            pl.BlockSpec((M, feat_dim), lambda i: (0, 0)),
            pl.BlockSpec((feat_dim, H), lambda i: (0, 0)),
            pl.BlockSpec((1, H), lambda i: (0, 0)),
            pl.BlockSpec((H, 2 * H), lambda i: (0, 0)),
            pl.BlockSpec((H, 2 * H), lambda i: (0, 0)),
            pl.BlockSpec((2 * H, 2 * H), lambda i: (0, 0)),
            pl.BlockSpec((2 * H, 2 * H), lambda i: (0, 0)),
            pl.BlockSpec((GR, M), lambda i: (0, 0)),
            pl.BlockSpec((GR, M), lambda i: (0, 0)),
            pl.BlockSpec((G, GR), lambda i: (0, 0)),
            pl.BlockSpec((G, H), lambda i: (0, 0)),
        ],
        out_specs=(
            pl.BlockSpec((G, H), lambda i: (0, 0)),
            pl.BlockSpec((1, 1), lambda i: (0, 0)),
        ),
        compiler_params=pltpu.CompilerParams(dimension_semantics=("arbitrary",)),
    )(x2d, params["w_enc"], params["b_enc"], w1a, w1b,
      params["w_r2"], params["w_r3"], s1, s2, avg, z2d)

    return latent2d.reshape(E, way_num, H), kl[0, 0]


def _reference_forward(x, params, z, *, way_num, shot_num, hid_dim):
    """Pure-JAX replica of the torch module (for a sanity check of the fusion)."""
    E = x.shape[0]
    H = hid_dim
    out = jnp.einsum("enf,fh->enh", x, params["w_enc"]) + params["b_enc"][0]
    out = out.reshape(E, way_num, shot_num, H)
    t1 = jnp.repeat(jnp.repeat(out, shot_num, axis=2), way_num, axis=1)
    t2 = jnp.tile(out, (1, way_num, shot_num, 1))
    pair = jnp.concatenate([t1, t2], axis=-1)
    h = jnp.maximum(pair @ params["w_r1"], 0.0)
    h = jnp.maximum(h @ params["w_r2"], 0.0)
    h = jnp.maximum(h @ params["w_r3"], 0.0)
    h = h.reshape(E, way_num, way_num * shot_num * shot_num, 2 * H)
    stats = jnp.mean(h, axis=2)
    mean, var = stats[:, :, :H], stats[:, :, H:]
    latent = mean + var * z
    eps = 1e-20
    c = 0.5 * math.log(2.0 * math.pi)
    lp_q = -0.5 * ((latent - mean) / (var + eps)) ** 2 - jnp.log(var + eps) - c
    lp_p = -0.5 * (latent / (1.0 + eps)) ** 2 - jnp.log(jnp.float32(1.0 + eps)) - c
    return latent, jnp.mean(lp_q - lp_p)


if __name__ == "__main__":
    # Small, module-consistent shapes.
    way_num, shot_num = 4, 2
    feat_dim, hid_dim = 32, 32
    episode_size = 2

    key = jax.random.PRNGKey(0)
    k1, k2, k3, k4, k5, kx, kz = jax.random.split(key, 7)

    # Deterministic synthetic parameters (nn.Linear weights stored as (in, out)).
    params = {
        "w_enc": 0.1 * jax.random.normal(k1, (feat_dim, hid_dim), jnp.float32),
        "b_enc": 0.1 * jax.random.normal(k2, (1, hid_dim), jnp.float32),
        "w_r1": 0.1 * jax.random.normal(k3, (2 * hid_dim, 2 * hid_dim), jnp.float32),
        "w_r2": 0.1 * jax.random.normal(k4, (2 * hid_dim, 2 * hid_dim), jnp.float32),
        "w_r3": 0.1 * jax.random.normal(k5, (2 * hid_dim, 2 * hid_dim), jnp.float32),
    }

    x = jax.random.normal(kx, (episode_size, way_num * shot_num, feat_dim), jnp.float32)
    # torch uses torch.normal(0,1) inside forward; we pass deterministic N(0,1) noise.
    z = jax.random.normal(kz, (episode_size, way_num, hid_dim), jnp.float32)

    latent, kl = encoder_forward(
        x, params, z,
        way_num=way_num, shot_num=shot_num, feat_dim=feat_dim, hid_dim=hid_dim)
    jax.block_until_ready((latent, kl))

    assert latent.shape == (episode_size, way_num, hid_dim)
    assert kl.shape == ()
    assert bool(jnp.isfinite(kl))

    # Sanity-check the fused/algebraically-restructured kernel against a plain
    # JAX replica of the torch graph (loose tolerance: MXU matmul precision).
    latent_ref, _ = _reference_forward(
        x, params, z, way_num=way_num, shot_num=shot_num, hid_dim=hid_dim)
    np.testing.assert_allclose(np.asarray(latent), np.asarray(latent_ref),
                               rtol=2e-2, atol=2e-2)

    print("KERNEL_OK")
</pallas_src>

<mosaic_0001>
module attributes {stable_mosaic.version = 11 : i64} {
  func.func @kernel(%arg0: i32, %arg1: memref<16x32xf32, #tpu.memory_space<vmem>>, %arg2: memref<32x32xf32, #tpu.memory_space<vmem>>, %arg3: memref<1x32xf32, #tpu.memory_space<vmem>>, %arg4: memref<32x64xf32, #tpu.memory_space<vmem>>, %arg5: memref<32x64xf32, #tpu.memory_space<vmem>>, %arg6: memref<64x64xf32, #tpu.memory_space<vmem>>, %arg7: memref<64x64xf32, #tpu.memory_space<vmem>>, %arg8: memref<128x16xf32, #tpu.memory_space<vmem>>, %arg9: memref<128x16xf32, #tpu.memory_space<vmem>>, %arg10: memref<8x128xf32, #tpu.memory_space<vmem>>, %arg11: memref<8x32xf32, #tpu.memory_space<vmem>>, %arg12: memref<8x32xf32, #tpu.memory_space<vmem>>, %arg13: memref<1x1xf32, #tpu.memory_space<vmem>>) attributes {dimension_semantics = [#tpu.dimension_semantics<arbitrary>], iteration_bounds = array<i64: 1>, scalar_prefetch = 0 : i64, scratch_operands = 0 : i64, tpu.core_type = #tpu.core_type<tc>, window_params = [{pipeline_mode = #tpu.pipeline_mode<synchronous>, transform_indices = @transform_0, window_bounds = array<i64: 16, 32>}, {pipeline_mode = #tpu.pipeline_mode<synchronous>, transform_indices = @transform_1, window_bounds = array<i64: 32, 32>}, {pipeline_mode = #tpu.pipeline_mode<synchronous>, transform_indices = @transform_2, window_bounds = array<i64: 1, 32>}, {pipeline_mode = #tpu.pipeline_mode<synchronous>, transform_indices = @transform_3, window_bounds = array<i64: 32, 64>}, {pipeline_mode = #tpu.pipeline_mode<synchronous>, transform_indices = @transform_4, window_bounds = array<i64: 32, 64>}, {pipeline_mode = #tpu.pipeline_mode<synchronous>, transform_indices = @transform_5, window_bounds = array<i64: 64, 64>}, {pipeline_mode = #tpu.pipeline_mode<synchronous>, transform_indices = @transform_6, window_bounds = array<i64: 64, 64>}, {pipeline_mode = #tpu.pipeline_mode<synchronous>, transform_indices = @transform_7, window_bounds = array<i64: 128, 16>}, {pipeline_mode = #tpu.pipeline_mode<synchronous>, transform_indices = @transform_8, window_bounds = array<i64: 128, 16>}, {pipeline_mode = #tpu.pipeline_mode<synchronous>, transform_indices = @transform_9, window_bounds = array<i64: 8, 128>}, {pipeline_mode = #tpu.pipeline_mode<synchronous>, transform_indices = @transform_10, window_bounds = array<i64: 8, 32>}, {pipeline_mode = #tpu.pipeline_mode<synchronous>, transform_indices = @transform_11, window_bounds = array<i64: 8, 32>}, {pipeline_mode = #tpu.pipeline_mode<synchronous>, transform_indices = @transform_12, window_bounds = array<i64: 1, 1>}]} {
    %c0 = arith.constant 0 : index
    %c0_0 = arith.constant 0 : index
    %0 = vector.load %arg1[%c0, %c0_0] : memref<16x32xf32, #tpu.memory_space<vmem>>, vector<16x32xf32>
    %c0_1 = arith.constant 0 : index
    %c0_2 = arith.constant 0 : index
    %1 = vector.load %arg2[%c0_1, %c0_2] : memref<32x32xf32, #tpu.memory_space<vmem>>, vector<32x32xf32>
    %cst = arith.constant dense<0.000000e+00> : vector<16x32xf32>
    %2 = tpu.matmul %0, %1, %cst {dimension_numbers = #tpu.dot_dimension_numbers<[1], [0], [0], [1], [0, 0, 1, 1], [], []>} : vector<16x32xf32>, vector<32x32xf32>, vector<16x32xf32> -> vector<16x32xf32>
    %c0_3 = arith.constant 0 : index
    %c0_4 = arith.constant 0 : index
    %3 = vector.load %arg3[%c0_3, %c0_4] : memref<1x32xf32, #tpu.memory_space<vmem>>, vector<1x32xf32>
    %4 = vector.broadcast %3 : vector<1x32xf32> to vector<16x32xf32>
    %5 = arith.addf %2, %4 : vector<16x32xf32>
    %c0_5 = arith.constant 0 : index
    %c0_6 = arith.constant 0 : index
    %6 = vector.load %arg4[%c0_5, %c0_6] : memref<32x64xf32, #tpu.memory_space<vmem>>, vector<32x64xf32>
    %cst_7 = arith.constant dense<0.000000e+00> : vector<16x64xf32>
    %7 = tpu.matmul %5, %6, %cst_7 {dimension_numbers = #tpu.dot_dimension_numbers<[1], [0], [0], [1], [0, 0, 1, 1], [], []>} : vector<16x32xf32>, vector<32x64xf32>, vector<16x64xf32> -> vector<16x64xf32>
    %c0_8 = arith.constant 0 : index
    %c0_9 = arith.constant 0 : index
    %8 = vector.load %arg5[%c0_8, %c0_9] : memref<32x64xf32, #tpu.memory_space<vmem>>, vector<32x64xf32>
    %cst_10 = arith.constant dense<0.000000e+00> : vector<16x64xf32>
    %9 = tpu.matmul %5, %8, %cst_10 {dimension_numbers = #tpu.dot_dimension_numbers<[1], [0], [0], [1], [0, 0, 1, 1], [], []>} : vector<16x32xf32>, vector<32x64xf32>, vector<16x64xf32> -> vector<16x64xf32>
    %c0_11 = arith.constant 0 : index
    %c0_12 = arith.constant 0 : index
    %10 = vector.load %arg8[%c0_11, %c0_12] : memref<128x16xf32, #tpu.memory_space<vmem>>, vector<128x16xf32>
    %cst_13 = arith.constant dense<0.000000e+00> : vector<128x64xf32>
    %11 = tpu.matmul %10, %7, %cst_13 {dimension_numbers = #tpu.dot_dimension_numbers<[1], [0], [0], [1], [0, 0, 1, 1], [], []>} : vector<128x16xf32>, vector<16x64xf32>, vector<128x64xf32> -> vector<128x64xf32>
    %c0_14 = arith.constant 0 : index
    %c0_15 = arith.constant 0 : index
    %12 = vector.load %arg9[%c0_14, %c0_15] : memref<128x16xf32, #tpu.memory_space<vmem>>, vector<128x16xf32>
    %cst_16 = arith.constant dense<0.000000e+00> : vector<128x64xf32>
    %13 = tpu.matmul %12, %9, %cst_16 {dimension_numbers = #tpu.dot_dimension_numbers<[1], [0], [0], [1], [0, 0, 1, 1], [], []>} : vector<128x16xf32>, vector<16x64xf32>, vector<128x64xf32> -> vector<128x64xf32>
    %14 = arith.addf %11, %13 : vector<128x64xf32>
    %cst_17 = arith.constant 0.000000e+00 : f32
    %15 = vector.broadcast %cst_17 : f32 to vector<128x64xf32>
    %16 = arith.maximumf %14, %15 : vector<128x64xf32>
    %c0_18 = arith.constant 0 : index
    %c0_19 = arith.constant 0 : index
    %17 = vector.load %arg6[%c0_18, %c0_19] : memref<64x64xf32, #tpu.memory_space<vmem>>, vector<64x64xf32>
    %cst_20 = arith.constant dense<0.000000e+00> : vector<128x64xf32>
    %18 = tpu.matmul %16, %17, %cst_20 {dimension_numbers = #tpu.dot_dimension_numbers<[1], [0], [0], [1], [0, 0, 1, 1], [], []>} : vector<128x64xf32>, vector<64x64xf32>, vector<128x64xf32> -> vector<128x64xf32>
    %cst_21 = arith.constant 0.000000e+00 : f32
    %19 = vector.broadcast %cst_21 : f32 to vector<128x64xf32>
    %20 = arith.maximumf %18, %19 : vector<128x64xf32>
    %c0_22 = arith.constant 0 : index
    %c0_23 = arith.constant 0 : index
    %21 = vector.load %arg7[%c0_22, %c0_23] : memref<64x64xf32, #tpu.memory_space<vmem>>, vector<64x64xf32>
    %cst_24 = arith.constant dense<0.000000e+00> : vector<128x64xf32>
    %22 = tpu.matmul %20, %21, %cst_24 {dimension_numbers = #tpu.dot_dimension_numbers<[1], [0], [0], [1], [0, 0, 1, 1], [], []>} : vector<128x64xf32>, vector<64x64xf32>, vector<128x64xf32> -> vector<128x64xf32>
    %cst_25 = arith.constant 0.000000e+00 : f32
    %23 = vector.broadcast %cst_25 : f32 to vector<128x64xf32>
    %24 = arith.maximumf %22, %23 : vector<128x64xf32>
    %c0_26 = arith.constant 0 : index
    %c0_27 = arith.constant 0 : index
    %25 = vector.load %arg10[%c0_26, %c0_27] : memref<8x128xf32, #tpu.memory_space<vmem>>, vector<8x128xf32>
    %cst_28 = arith.constant dense<0.000000e+00> : vector<8x64xf32>
    %26 = tpu.matmul %25, %24, %cst_28 {dimension_numbers = #tpu.dot_dimension_numbers<[1], [0], [0], [1], [0, 0, 1, 1], [], []>} : vector<8x128xf32>, vector<128x64xf32>, vector<8x64xf32> -> vector<8x64xf32>
    %27 = vector.extract_strided_slice %26 {offsets = [0, 0], sizes = [8, 32], strides = [1, 1]} : vector<8x64xf32> to vector<8x32xf32>
    %28 = vector.extract_strided_slice %26 {offsets = [0, 32], sizes = [8, 32], strides = [1, 1]} : vector<8x64xf32> to vector<8x32xf32>
    %c0_29 = arith.constant 0 : index
    %c0_30 = arith.constant 0 : index
    %29 = vector.load %arg11[%c0_29, %c0_30] : memref<8x32xf32, #tpu.memory_space<vmem>>, vector<8x32xf32>
    %30 = arith.mulf %28, %29 : vector<8x32xf32>
    %31 = arith.addf %27, %30 : vector<8x32xf32>
    %c0_31 = arith.constant 0 : index
    %c0_32 = arith.constant 0 : index
    %32 = vector.load %arg12[%c0_31, %c0_32] : memref<8x32xf32, #tpu.memory_space<vmem>>, vector<8x32xf32>
    tpu.vector_store %arg12[%c0_31, %c0_32], %31 {strides = array<i32>} : memref<8x32xf32, #tpu.memory_space<vmem>>, vector<8x32xf32>,
    %33 = arith.subf %31, %27 : vector<8x32xf32>
    %cst_33 = arith.constant 9.99999968E-21 : f32
    %34 = vector.broadcast %cst_33 : f32 to vector<8x32xf32>
    %35 = arith.addf %28, %34 : vector<8x32xf32>
    %36 = arith.divf %33, %35 : vector<8x32xf32>
    %cst_34 = arith.constant -5.000000e-01 : f32
    %37 = vector.broadcast %cst_34 : f32 to vector<8x32xf32>
    %38 = arith.mulf %37, %36 : vector<8x32xf32>
    %39 = arith.mulf %38, %36 : vector<8x32xf32>
    %cst_35 = arith.constant 9.99999968E-21 : f32
    %40 = vector.broadcast %cst_35 : f32 to vector<8x32xf32>
    %41 = arith.addf %28, %40 : vector<8x32xf32>
    %42 = math.log %41 : vector<8x32xf32>
    %43 = arith.subf %39, %42 : vector<8x32xf32>
    %cst_36 = arith.constant 5.000000e-01 : f32
    %44 = vector.broadcast %cst_36 : f32 to vector<8x32xf32>
    %45 = arith.mulf %44, %31 : vector<8x32xf32>
    %46 = arith.mulf %45, %31 : vector<8x32xf32>
    %47 = arith.addf %43, %46 : vector<8x32xf32>
    %48 = vector.shape_cast %47 : vector<8x32xf32> to vector<1x8x32xf32>
    %cst_37 = arith.constant dense<0.000000e+00> : vector<1xf32>
    %49 = vector.multi_reduction <add>, %48, %cst_37 [1, 2] : vector<1x8x32xf32> to vector<1xf32>
    %50 = vector.shape_cast %49 : vector<1xf32> to vector<1x1x1xf32>
    %51 = vector.extract %50[0, 0, 0] : f32 from vector<1x1x1xf32>
    %cst_38 = arith.constant 2.560000e+02 : f32
    %52 = arith.divf %51, %cst_38 : f32
    %53 = vector.broadcast %52 : f32 to vector<1x1xf32>
    %c0_39 = arith.constant 0 : index
    %c0_40 = arith.constant 0 : index
    %54 = vector.load %arg13[%c0_39, %c0_40] : memref<1x1xf32, #tpu.memory_space<vmem>>, vector<1x1xf32>
    tpu.vector_store %arg13[%c0_39, %c0_40], %53 {strides = array<i32>} : memref<1x1xf32, #tpu.memory_space<vmem>>, vector<1x1xf32>,
    return
  }
  func.func @transform_0(%arg0: i32) -> (i32, i32) {
    %c0_i32 = arith.constant 0 : i32
    %c0_i32_0 = arith.constant 0 : i32
    %c0_i32_1 = arith.constant 0 : i32
    return %c0_i32, %c0_i32_0 : i32, i32
  }
  func.func @transform_1(%arg0: i32) -> (i32, i32) {
    %c0_i32 = arith.constant 0 : i32
    %c0_i32_0 = arith.constant 0 : i32
    %c0_i32_1 = arith.constant 0 : i32
    return %c0_i32, %c0_i32_0 : i32, i32
  }
  func.func @transform_2(%arg0: i32) -> (i32, i32) {
    %c0_i32 = arith.constant 0 : i32
    %c0_i32_0 = arith.constant 0 : i32
    %c0_i32_1 = arith.constant 0 : i32
    return %c0_i32, %c0_i32_0 : i32, i32
  }
  func.func @transform_3(%arg0: i32) -> (i32, i32) {
    %c0_i32 = arith.constant 0 : i32
    %c0_i32_0 = arith.constant 0 : i32
    %c0_i32_1 = arith.constant 0 : i32
    return %c0_i32, %c0_i32_0 : i32, i32
  }
  func.func @transform_4(%arg0: i32) -> (i32, i32) {
    %c0_i32 = arith.constant 0 : i32
    %c0_i32_0 = arith.constant 0 : i32
    %c0_i32_1 = arith.constant 0 : i32
    return %c0_i32, %c0_i32_0 : i32, i32
  }
  func.func @transform_5(%arg0: i32) -> (i32, i32) {
    %c0_i32 = arith.constant 0 : i32
    %c0_i32_0 = arith.constant 0 : i32
    %c0_i32_1 = arith.constant 0 : i32
    return %c0_i32, %c0_i32_0 : i32, i32
  }
  func.func @transform_6(%arg0: i32) -> (i32, i32) {
    %c0_i32 = arith.constant 0 : i32
    %c0_i32_0 = arith.constant 0 : i32
    %c0_i32_1 = arith.constant 0 : i32
    return %c0_i32, %c0_i32_0 : i32, i32
  }
  func.func @transform_7(%arg0: i32) -> (i32, i32) {
    %c0_i32 = arith.constant 0 : i32
    %c0_i32_0 = arith.constant 0 : i32
    %c0_i32_1 = arith.constant 0 : i32
    return %c0_i32, %c0_i32_0 : i32, i32
  }
  func.func @transform_8(%arg0: i32) -> (i32, i32) {
    %c0_i32 = arith.constant 0 : i32
    %c0_i32_0 = arith.constant 0 : i32
    %c0_i32_1 = arith.constant 0 : i32
    return %c0_i32, %c0_i32_0 : i32, i32
  }
  func.func @transform_9(%arg0: i32) -> (i32, i32) {
    %c0_i32 = arith.constant 0 : i32
    %c0_i32_0 = arith.constant 0 : i32
    %c0_i32_1 = arith.constant 0 : i32
    return %c0_i32, %c0_i32_0 : i32, i32
  }
  func.func @transform_10(%arg0: i32) -> (i32, i32) {
    %c0_i32 = arith.constant 0 : i32
    %c0_i32_0 = arith.constant 0 : i32
    %c0_i32_1 = arith.constant 0 : i32
    return %c0_i32, %c0_i32_0 : i32, i32
  }
  func.func @transform_11(%arg0: i32) -> (i32, i32) {
    %c0_i32 = arith.constant 0 : i32
    %c0_i32_0 = arith.constant 0 : i32
    %c0_i32_1 = arith.constant 0 : i32
    return %c0_i32, %c0_i32_0 : i32, i32
  }
  func.func @transform_12(%arg0: i32) -> (i32, i32) {
    %c0_i32 = arith.constant 0 : i32
    %c0_i32_0 = arith.constant 0 : i32
    %c0_i32_1 = arith.constant 0 : i32
    return %c0_i32, %c0_i32_0 : i32, i32
  }
}

</mosaic_0001>

<bundles_post_ra>
// kernel: encoder_forward.1
= control target key start
LH: loop header
LB: loop body
LE: loop exit
PB: predicated region body
PF: predicated region fallthrough
CT: control target
= control target key end

     0   :  { %18 = vsyncpa [#allocation3], 0  ;;  %s1473_s0 = inlined_call_operand.hbm [shape: f32[16,32], index: 0, kind: input, shape index: {}]   ;;  %s1474_s1 = inlined_call_operand.hbm [shape: f32[32,32], index: 1, kind: input, shape index: {}]   ;;  %s1475_s2 = inlined_call_operand.vmem [shape: f32[1,32], index: 2, kind: input, shape index: {}]   ;;  %s1476_s3 = inlined_call_operand.vmem [shape: f32[32,64], index: 3, kind: input, shape index: {}]   ;;  %s1477_s4 = inlined_call_operand.vmem [shape: f32[32,64], index: 4, kind: input, shape index: {}]   ;;  %s1478_s5 = inlined_call_operand.hbm [shape: f32[64,64], index: 5, kind: input, shape index: {}]   ;;  %s1479_s6 = inlined_call_operand.hbm [shape: f32[64,64], index: 6, kind: input, shape index: {}]   ;;  %s1480_s7 = inlined_call_operand.hbm [shape: f32[128,16], index: 7, kind: input, shape index: {}]   ;;  %s1481_s8 = inlined_call_operand.vmem [shape: f32[128,16], index: 8, kind: input, shape index: {}]   ;;  %s1482_s9 = inlined_call_operand.hbm [shape: f32[8,128], index: 9, kind: input, shape index: {}]   ;;  %s1483_s10 = inlined_call_operand.vmem [shape: f32[8,32], index: 10, kind: input, shape index: {}]   ;;  %s1484_s11 = inlined_call_operand.hbm [shape: f32[8,32], index: 11, kind: output, shape index: {0}]   ;;  %s1485_s12 = inlined_call_operand.hbm [shape: f32[1,1], index: 12, kind: output, shape index: {1}]  }
   0x1   :  { %19 = vsyncpa [#allocation6], 0 }
   0x2   :  { %20 = vsyncpa [#allocation9], 0 }
   0x3   :  { %21 = vsyncpa [#allocation12], 0 }
   0x4   :  { %22 = vsyncpa [#allocation4], 0 }
   0x5   :  { %23 = vsyncpa [#allocation15], 0  ;;  %s41_s23 = sshll.u32 %s1474_s1, 4  ;;  %s1206_s24 = smov [#allocation5]   ;;  %s42_s23 = int_to_ptr.hbm [resolvable:$true] %s41_s23 }
   0x6   :  { %s43_s25 = sshll.u32 %s1206_s24, 4  ;;  %s73_s28 = sshll.u32 %s1479_s6, 4  ;;  %s44_s25 = int_to_ptr.vmem [resolvable:$true] %s43_s25  ;;  %s74_s28 = int_to_ptr.hbm [resolvable:$true] %s73_s28 }
   0x7   :  { %s1207_s29 = smov 128   ;;  %s1208_s30 = smov 8  }
   0x8   :  { %49 = dma.hbm_to_vmem [thread:$0]  %s42_s23, 512, %s44_s25, [#allocation6], %s1207_s29, %s1207_s29, %s1208_s30  }
   0x9   :  { %s1209_s13 = smov [#allocation8]   ;;  %s28_s1 = sshll.u32 %s1473_s0, 4  ;;  %s29_s1 = int_to_ptr.hbm [resolvable:$true] %s28_s1 }
   0xa   :  { %s75_s14 = sshll.u32 %s1209_s13, 4  ;;  %s60_s18 = sshll.u32 %s1478_s5, 4  ;;  %s76_s14 = int_to_ptr.vmem [resolvable:$true] %s75_s14  ;;  %s61_s18 = int_to_ptr.hbm [resolvable:$true] %s60_s18 }
   0xb   :  { %81 = dma.hbm_to_vmem [thread:$0]  %s74_s28, 1024, %s76_s14, [#allocation9], %s1207_s29, %s1207_s29, %s1208_s30  }
   0xc   :  { %s1210_s19 = smov [#allocation2]   ;;  %s1211_s21 = smov [#allocation7]  }
   0xd   :  { %s30_s20 = sshll.u32 %s1210_s19, 4  ;;  %s62_s0 = sshll.u32 %s1211_s21, 4  ;;  %s31_s20 = int_to_ptr.vmem [resolvable:$true] %s30_s20  ;;  %s63_s0 = int_to_ptr.vmem [resolvable:$true] %s62_s0 }
   0xe   :  { %36 = dma.hbm_to_vmem [thread:$0]  %s29_s1, 256, %s31_s20, [#allocation3], %s1207_s29, %s1207_s29, %s1208_s30  }
   0xf   :  { %s86_s24 = sshll.u32 %s1480_s7, 4  ;;  %s102_s26 = sshll.u32 %s1482_s9, 4  ;;  %s87_s24 = int_to_ptr.hbm [resolvable:$true] %s86_s24  ;;  %s103_s26 = int_to_ptr.hbm [resolvable:$true] %s102_s26 }
  0x10   :  { %68 = dma.hbm_to_vmem [thread:$0]  %s61_s18, 1024, %s63_s0, [#allocation6], %s1207_s29, %s1207_s29, %s1208_s30  }
  0x11   :  { %s1212_s27 = smov [#allocation10]   ;;  %s1213_s13 = smov [#allocation11]  }
  0x12   :  { %s88_s28 = sshll.u32 %s1212_s27, 4  ;;  %s104_s7 = sshll.u32 %s1213_s13, 4  ;;  %s89_s28 = int_to_ptr.vmem [resolvable:$true] %s88_s28  ;;  %s105_s7 = int_to_ptr.vmem [resolvable:$true] %s104_s7 }
  0x13   :  { %94 = dma.hbm_to_vmem [thread:$0]  %s87_s24, 2048, %s89_s28, [#allocation9], %s1207_s29, %s1207_s29, %s1208_s30  }
  0x14   :  { %107 = dma.hbm_to_vmem [thread:$0]  %s103_s26, 128, %s105_s7, [#allocation12]  }
  0x15   :  { %1194 = dma.done.wait [#allocation3], 256  }
  0x16   :  { %1195 = vsyncadd [#allocation3], 4294967040 }
  0x17   :  { %1196 = dma.done.wait [#allocation6], 1536  }
  0x18   :  { %1197 = vsyncadd [#allocation6], 4294965760 }
  0x19   :  { %1198 = dma.done.wait [#allocation9], 3072  }
  0x1a   :  { %1199 = vsyncadd [#allocation9], 4294964224 }
  0x1b   :  { %1200 = dma.done.wait [#allocation12], 128  }
  0x1c   :  { %1201 = vsyncadd [#allocation12], 4294967168  ;;  %v139_v0 = vld [vmem:[#allocation5 + $0x18] sm:$0xff]  ;;  %v138_v1 = vld [vmem:[#allocation5 + $0x10] sm:$0xff]  ;;  %vm144_vm0 = vcmask 261120   ;;  %vm266_vm1 = vcmask 130048  }
  0x1d   :  { %163 = vmatpush.msra.mxu0 %v139_v0  ;;  %v137_v2 = vld [vmem:[#allocation5 + $0x8] sm:$0xff]  ;;  %v176_v5 = vld [vmem:[%s1476_s3 + $0x10] sm:$0xff]  ;;  %v134_v8 = vld [vmem:[#allocation2] sm:$0xff]  ;;  %vm517_vm2 = vcmask 523264   ;;  %s1214_s28 = smov 32   ;;  %s1216_s13 = smov [#allocation13]  }
  0x1e   :  { %v177_v3 = vld [vmem:[%s1476_s3 + $0x18] sm:$0xff]  ;;  %v209_v6 = vld [vmem:[%s1477_s4 + $0x10] sm:$0xff]  ;;  %v135_v9 = vld [vmem:[#allocation2 + $0x8] sm:$0xff]  ;;  %s877_s7 = sshll.u32 %s1216_s13, 4  ;;  %s879_s29 = sshll.u32 %s1484_s11, 4  ;;  %vm870_vm8 = vcmask 0   ;;  %s878_s7 = int_to_ptr.vmem [resolvable:$true] %s877_s7  ;;  %s880_s29 = int_to_ptr.hbm [resolvable:$true] %s879_s29 }
  0x1f   :  { %v210_v4 = vld [vmem:[%s1477_s4 + $0x18] sm:$0xff]  ;;  %164 = vmatpush.msra.mxu0 %v138_v1  ;;  %196 = vmatpush.msra.mxu1 %v177_v3  ;;  %v136_v7 = vld [vmem:[#allocation5] sm:$0xff]  ;;  %v175_v10 = vld [vmem:[%s1476_s3 + $0x8] sm:$0xff]  ;;  %s1218_s11 = smov [#allocation14]   ;;  %s890_s6 = sshll.u32 %s1485_s12, 4  ;;  %s891_s6 = int_to_ptr.hbm [resolvable:$true] %s890_s6 }
  0x20   :  { %223 = vmatpush.msra.mxu2 %v210_v4  ;;  %v208_v11 = vld [vmem:[%s1477_s4 + $0x8] sm:$0xff]  ;;  %v174_v12 = vld [vmem:[%s1476_s3] sm:$0xff]  ;;  %v234_v22 = vld [vmem:[#allocation10] sm:$0xff]  ;;  %s888_s30 = sshll.u32 %s1218_s11, 4  ;;  %s889_s30 = int_to_ptr.vmem [resolvable:$true] %s888_s30 }
  0x21   :  { %165 = vmatpush.msra.mxu0 %v137_v2  ;;  %197 = vmatpush.msra.mxu1 %v176_v5  ;;  %v207_v13 = vld [vmem:[%s1477_s4] sm:$0xff]  ;;  %v235_v25 = vld [vmem:[#allocation10 + $0x8] sm:$0xff]  ;;  %v251_v26 = vld [vmem:[%s1481_s8 + $0x8] sm:$0xff] }
  0x22   :  { %224 = vmatpush.msra.mxu2 %v209_v6  ;;  %v995_v14 = vld [vmem:[%s1475_s2] ss:$0 sm:$0xff]  ;;  %v252_v28 = vld [vmem:[%s1481_s8 + $0x10] sm:$0xff]  ;;  %v237_v29 = vld [vmem:[#allocation10 + $0x18] sm:$0xff] }
  0x23   :  { %166 = vmatpush.msra.mxu0 %v136_v7  ;;  %198 = vmatpush.msra.mxu1 %v175_v10  ;;  %v250_v24 = vld [vmem:[%s1481_s8] sm:$0xff]  ;;  %v253_v30 = vld [vmem:[%s1481_s8 + $0x18] sm:$0xff]  ;;  %v238_v31 = vld [vmem:[#allocation10 + $0x20] sm:$0xff] }
  0x24   :  { %908 = vmatmul.msk.f32.vlgmr.msra.gmra.mxu0 %vm144_vm0, %v134_v8  ;;  %225 = vmatpush.msra.mxu2 %v208_v11  ;;  %v236_v27 = vld [vmem:[#allocation10 + $0x10] sm:$0xff]  ;;  %v239_v33 = vld [vmem:[#allocation10 + $0x28] sm:$0xff]  ;;  %v255_v34 = vld [vmem:[%s1481_s8 + $0x28] sm:$0xff] }
  0x25   :  { %199 = vmatpush.msra.mxu1 %v174_v12  ;;  %v254_v32 = vld [vmem:[%s1481_s8 + $0x20] sm:$0xff]  ;;  %v256_v36 = vld [vmem:[%s1481_s8 + $0x30] sm:$0xff]  ;;  %v241_v37 = vld [vmem:[#allocation10 + $0x38] sm:$0xff] }
  0x26   :  { %226 = vmatpush.msra.mxu2 %v207_v13  ;;  %v240_v35 = vld [vmem:[#allocation10 + $0x30] sm:$0xff]  ;;  %v257_v38 = vld [vmem:[%s1481_s8 + $0x38] sm:$0xff]  ;;  %v242_v39 = vld [vmem:[#allocation10 + $0x40] sm:$0xff] }
  0x27   :  { %v258_v40 = vld [vmem:[%s1481_s8 + $0x40] sm:$0xff]  ;;  %v243_v41 = vld [vmem:[#allocation10 + $0x48] sm:$0xff]  ;;  %v259_v42 = vld [vmem:[%s1481_s8 + $0x48] sm:$0xff] }
  0x28   :  { %v244_v43 = vld [vmem:[#allocation10 + $0x50] sm:$0xff]  ;;  %v260_v44 = vld [vmem:[%s1481_s8 + $0x50] sm:$0xff]  ;;  %v245_v45 = vld [vmem:[#allocation10 + $0x58] sm:$0xff] }
  0x29   :  { %v261_v46 = vld [vmem:[%s1481_s8 + $0x58] sm:$0xff]  ;;  %v246_v47 = vld [vmem:[#allocation10 + $0x60] sm:$0xff]  ;;  %v516_v48 = vld [vmem:[#allocation7 + $0x38] sm:$0xff] }
  0x2a   :  { %v515_v49 = vld [vmem:[#allocation7 + $0x30] sm:$0xff]  ;;  %574 = vmatpush.msrb.mxu1 %v516_v48  ;;  %v514_v50 = vld [vmem:[#allocation7 + $0x28] sm:$0xff]  ;;  %v513_v51 = vld [vmem:[#allocation7 + $0x20] sm:$0xff] }
  0x2b   :  { %v262_v52 = vld [vmem:[%s1481_s8 + $0x60] sm:$0xff]  ;;  %v512_v53 = vld [vmem:[#allocation7 + $0x18] sm:$0xff]  ;;  %v247_v54 = vld [vmem:[#allocation10 + $0x68] sm:$0xff] }
  0x2c   :  { %909 = vmatmul.msk.f32.gmra.mxu0 %vm144_vm0, %v135_v9  ;;  %575 = vmatpush.msrb.mxu1 %v515_v49  ;;  %v511_v55 = vld [vmem:[#allocation7 + $0x10] sm:$0xff]  ;;  %v510_v56 = vld [vmem:[#allocation7 + $0x8] sm:$0xff]  ;;  %v263_v57 = vld [vmem:[%s1481_s8 + $0x68] sm:$0xff] }
  0x2d   :  { %v509_v58 = vld [vmem:[#allocation7] sm:$0xff]  ;;  %v248_v59 = vld [vmem:[#allocation10 + $0x70] sm:$0xff]  ;;  %v249_v61 = vld [vmem:[#allocation10 + $0x78] sm:$0xff] }
  0x2e   :  { %576 = vmatpush.msrb.mxu1 %v514_v50  ;;  %v264_v60 = vld [vmem:[%s1481_s8 + $0x70] sm:$0xff]  ;;  %v265_v62 = vld [vmem:[%s1481_s8 + $0x78] sm:$0xff] }
  0x2f   :  { %v652_v49 = vld [vmem:[#allocation8 + $0x28] sm:$0xff] }
  0x30   :  { %577 = vmatpush.msrb.mxu1 %v513_v51  ;;  %v651_v51 = vld [vmem:[#allocation8 + $0x20] sm:$0xff] }
  0x32   :  { %578 = vmatpush.msrb.mxu1 %v512_v53  ;;  %v649_v53 = vld [vmem:[#allocation8 + $0x10] sm:$0xff] }
  0x34   :  { %579 = vmatpush.msrb.mxu1 %v511_v55 }
  0x36   :  { %580 = vmatpush.msrb.mxu1 %v510_v56  ;;  %v648_v56 = vld [vmem:[#allocation8 + $0x8] sm:$0xff] }
  0x38   :  { %581 = vmatpush.msrb.mxu1 %v509_v58 }
  0xa1   :  { %v168_v15 = vpop.f32.mrf.mxu0 }
  0xa2   :  { %v169_v16 = vadd.f32 %v995_v14, %v168_v15 }
  0xa4   :  { %910 = vmatmul.msk.f32.vlgmr.msra.gmra.mxu1 %vm144_vm0, %v169_v16  ;;  %912 = vmatmul.msk.f32.vlgmr.msra.gmra.mxu2 %vm144_vm0, %v169_v16 }
  0xa9   :  { %v171_v17 = vpop.f32.mrf.mxu0 }
  0xaa   :  { %v172_v18 = vadd.f32 %v995_v14, %v171_v17 }
  0xac   :  { %911 = vmatmul.msk.f32.gmra.mxu1 %vm144_vm0, %v172_v18  ;;  %913 = vmatmul.msk.f32.gmra.mxu2 %vm144_vm0, %v172_v18 }
 0x121   :  { %v201_v19 = vpop.f32.mrf.mxu1 }
 0x127   :  { %v228_v20 = vpop.f32.mrf.mxu2 }
 0x129   :  { %v204_v21 = vpop.f32.mrf.mxu1 }
 0x12a   :  { %442 = vmatpush.msrb.mxu0 %v204_v21 }
 0x12c   :  { %443 = vmatpush.msrb.mxu0 %v201_v19 }
 0x12d   :  { %930 = vmatmul.msk.f32.vlgmr.msrb.gmra.mxu0 %vm266_vm1, %v234_v22 }
 0x12f   :  { %v231_v23 = vpop.f32.mrf.mxu2 }
 0x130   :  { %329 = vmatpush.msra.mxu3 %v231_v23 }
 0x132   :  { %330 = vmatpush.msra.mxu3 %v228_v20 }
 0x133   :  { %914 = vmatmul.msk.f32.vlgmr.msra.gmra.mxu3 %vm266_vm1, %v250_v24 }
 0x135   :  { %931 = vmatmul.msk.f32.gmra.mxu0 %vm266_vm1, %v235_v25 }
 0x13b   :  { %915 = vmatmul.msk.f32.gmra.mxu3 %vm266_vm1, %v251_v26 }
 0x13d   :  { %932 = vmatmul.msk.f32.gmra.mxu0 %vm266_vm1, %v236_v27 }
 0x143   :  { %916 = vmatmul.msk.f32.gmra.mxu3 %vm266_vm1, %v252_v28 }
 0x145   :  { %933 = vmatmul.msk.f32.gmra.mxu0 %vm266_vm1, %v237_v29 }
 0x14b   :  { %917 = vmatmul.msk.f32.gmra.mxu3 %vm266_vm1, %v253_v30 }
 0x14d   :  { %934 = vmatmul.msk.f32.gmra.mxu0 %vm266_vm1, %v238_v31 }
 0x153   :  { %918 = vmatmul.msk.f32.gmra.mxu3 %vm266_vm1, %v254_v32 }
 0x155   :  { %935 = vmatmul.msk.f32.gmra.mxu0 %vm266_vm1, %v239_v33 }
 0x15b   :  { %919 = vmatmul.msk.f32.gmra.mxu3 %vm266_vm1, %v255_v34 }
 0x15d   :  { %936 = vmatmul.msk.f32.gmra.mxu0 %vm266_vm1, %v240_v35 }
 0x163   :  { %920 = vmatmul.msk.f32.gmra.mxu3 %vm266_vm1, %v256_v36 }
 0x165   :  { %937 = vmatmul.msk.f32.gmra.mxu0 %vm266_vm1, %v241_v37 }
 0x16b   :  { %921 = vmatmul.msk.f32.gmra.mxu3 %vm266_vm1, %v257_v38 }
 0x16d   :  { %938 = vmatmul.msk.f32.gmra.mxu0 %vm266_vm1, %v242_v39 }
 0x173   :  { %922 = vmatmul.msk.f32.gmra.mxu3 %vm266_vm1, %v258_v40 }
 0x175   :  { %939 = vmatmul.msk.f32.gmra.mxu0 %vm266_vm1, %v243_v41 }
 0x17b   :  { %923 = vmatmul.msk.f32.gmra.mxu3 %vm266_vm1, %v259_v42 }
 0x17d   :  { %940 = vmatmul.msk.f32.gmra.mxu0 %vm266_vm1, %v244_v43 }
 0x183   :  { %924 = vmatmul.msk.f32.gmra.mxu3 %vm266_vm1, %v260_v44  ;;  %v654_v44 = vld [vmem:[#allocation8 + $0x38] sm:$0xff] }
 0x184   :  { %711 = vmatpush.msrb.mxu2 %v654_v44 }
 0x185   :  { %941 = vmatmul.msk.f32.gmra.mxu0 %vm266_vm1, %v245_v45  ;;  %v653_v45 = vld [vmem:[#allocation8 + $0x30] sm:$0xff] }
 0x186   :  { %712 = vmatpush.msrb.mxu2 %v653_v45 }
 0x188   :  { %713 = vmatpush.msrb.mxu2 %v652_v49 }
 0x18a   :  { %714 = vmatpush.msrb.mxu2 %v651_v51 }
 0x18b   :  { %925 = vmatmul.msk.f32.gmra.mxu3 %vm266_vm1, %v261_v46 }
 0x18d   :  { %942 = vmatmul.msk.f32.gmra.mxu0 %vm266_vm1, %v246_v47 }
 0x193   :  { %926 = vmatmul.msk.f32.gmra.mxu3 %vm266_vm1, %v262_v52  ;;  %v650_v52 = vld [vmem:[#allocation8 + $0x18] sm:$0xff] }
 0x194   :  { %715 = vmatpush.msrb.mxu2 %v650_v52 }
 0x195   :  { %943 = vmatmul.msk.f32.gmra.mxu0 %vm266_vm1, %v247_v54 }
 0x196   :  { %716 = vmatpush.msrb.mxu2 %v649_v53 }
 0x198   :  { %717 = vmatpush.msrb.mxu2 %v648_v56  ;;  %v805_v56 = vld [vmem:[%s1483_s10] sm:$0xff]  ;;  %s1215_s10 = smov 96  }
 0x199   :  { %807 = vrot.lane.b32.xlu0 %v805_v56, %s1214_s28 }
 0x19b   :  { %927 = vmatmul.msk.f32.gmra.mxu3 %vm266_vm1, %v263_v57 }
 0x19d   :  { %944 = vmatmul.msk.f32.gmra.mxu0 %vm266_vm1, %v248_v59  ;;  %v647_v59 = vld [vmem:[#allocation8] sm:$0xff] }
 0x19e   :  { %718 = vmatpush.msrb.mxu2 %v647_v59 }
 0x1a3   :  { %928 = vmatmul.msk.f32.gmra.mxu3 %vm266_vm1, %v264_v60 }
 0x1a5   :  { %945 = vmatmul.msk.f32.gmra.mxu0 %vm266_vm1, %v249_v61 }
 0x1aa   :  { %v445_v63 = vpop.f32.mrf.mxu0 }
 0x1ab   :  { %929 = vmatmul.msk.f32.gmra.mxu3 %vm266_vm1, %v265_v62 }
 0x1b2   :  { %v448_v0 = vpop.f32.mrf.mxu0 }
 0x1b6   :  { %v332_v1 = vpop.f32.mrf.mxu3 }
 0x1b7   :  { %v446_v2 = vadd.f32 %v445_v63, %v332_v1 }
 0x1b9   :  { %v493_v3 = vmax.f32 %v446_v2, 0.0 }
 0x1ba   :  { %v451_v4 = vpop.f32.mrf.mxu0 }
 0x1bb   :  { %946 = vmatmul.msk.f32.vlgmr.msrb.gmra.mxu1 %vm517_vm2, %v493_v3 }
 0x1be   :  { %v335_v5 = vpop.f32.mrf.mxu3 }
 0x1bf   :  { %v449_v6 = vadd.f32 %v448_v0, %v335_v5 }
 0x1c1   :  { %v494_v7 = vmax.f32 %v449_v6, 0.0 }
 0x1c2   :  { %v454_v8 = vpop.f32.mrf.mxu0 }
 0x1c3   :  { %947 = vmatmul.msk.f32.gmra.mxu1 %vm517_vm2, %v494_v7 }
 0x1c6   :  { %v338_v9 = vpop.f32.mrf.mxu3 }
 0x1c7   :  { %v452_v10 = vadd.f32 %v451_v4, %v338_v9 }
 0x1c9   :  { %v495_v11 = vmax.f32 %v452_v10, 0.0 }
 0x1ca   :  { %v457_v12 = vpop.f32.mrf.mxu0 }
 0x1cb   :  { %948 = vmatmul.msk.f32.gmra.mxu1 %vm517_vm2, %v495_v11 }
 0x1ce   :  { %v341_v13 = vpop.f32.mrf.mxu3 }
 0x1cf   :  { %v455_v14 = vadd.f32 %v454_v8, %v341_v13 }
 0x1d1   :  { %v496_v15 = vmax.f32 %v455_v14, 0.0 }
 0x1d2   :  { %v460_v16 = vpop.f32.mrf.mxu0 }
 0x1d3   :  { %949 = vmatmul.msk.f32.gmra.mxu1 %vm517_vm2, %v496_v15 }
 0x1d6   :  { %v344_v17 = vpop.f32.mrf.mxu3 }
 0x1d7   :  { %v458_v18 = vadd.f32 %v457_v12, %v344_v17 }
 0x1d9   :  { %v497_v19 = vmax.f32 %v458_v18, 0.0 }
 0x1da   :  { %v463_v20 = vpop.f32.mrf.mxu0 }
 0x1db   :  { %950 = vmatmul.msk.f32.gmra.mxu1 %vm517_vm2, %v497_v19 }
 0x1de   :  { %v347_v21 = vpop.f32.mrf.mxu3 }
 0x1df   :  { %v461_v22 = vadd.f32 %v460_v16, %v347_v21 }
 0x1e1   :  { %v498_v23 = vmax.f32 %v461_v22, 0.0 }
 0x1e2   :  { %v466_v24 = vpop.f32.mrf.mxu0 }
 0x1e3   :  { %951 = vmatmul.msk.f32.gmra.mxu1 %vm517_vm2, %v498_v23 }
 0x1e6   :  { %v350_v25 = vpop.f32.mrf.mxu3 }
 0x1e7   :  { %v464_v26 = vadd.f32 %v463_v20, %v350_v25 }
 0x1e9   :  { %v499_v27 = vmax.f32 %v464_v26, 0.0 }
 0x1ea   :  { %v469_v28 = vpop.f32.mrf.mxu0 }
 0x1eb   :  { %952 = vmatmul.msk.f32.gmra.mxu1 %vm517_vm2, %v499_v27 }
 0x1ee   :  { %v353_v29 = vpop.f32.mrf.mxu3 }
 0x1ef   :  { %v467_v30 = vadd.f32 %v466_v24, %v353_v29 }
 0x1f1   :  { %v500_v31 = vmax.f32 %v467_v30, 0.0 }
 0x1f2   :  { %v472_v32 = vpop.f32.mrf.mxu0 }
 0x1f3   :  { %953 = vmatmul.msk.f32.gmra.mxu1 %vm517_vm2, %v500_v31 }
 0x1f6   :  { %v356_v33 = vpop.f32.mrf.mxu3 }
 0x1f7   :  { %v470_v34 = vadd.f32 %v469_v28, %v356_v33 }
 0x1f9   :  { %v501_v35 = vmax.f32 %v470_v34, 0.0 }
 0x1fa   :  { %v475_v36 = vpop.f32.mrf.mxu0 }
 0x1fb   :  { %954 = vmatmul.msk.f32.gmra.mxu1 %vm517_vm2, %v501_v35 }
 0x1fe   :  { %v359_v37 = vpop.f32.mrf.mxu3 }
 0x1ff   :  { %v473_v38 = vadd.f32 %v472_v32, %v359_v37 }
 0x201   :  { %v502_v39 = vmax.f32 %v473_v38, 0.0 }
 0x202   :  { %v478_v40 = vpop.f32.mrf.mxu0 }
 0x203   :  { %955 = vmatmul.msk.f32.gmra.mxu1 %vm517_vm2, %v502_v39 }
 0x206   :  { %v362_v41 = vpop.f32.mrf.mxu3 }
 0x207   :  { %v476_v42 = vadd.f32 %v475_v36, %v362_v41 }
 0x209   :  { %v503_v43 = vmax.f32 %v476_v42, 0.0 }
 0x20a   :  { %v481_v47 = vpop.f32.mrf.mxu0 }
 0x20b   :  { %956 = vmatmul.msk.f32.gmra.mxu1 %vm517_vm2, %v503_v43 }
 0x20e   :  { %v365_v46 = vpop.f32.mrf.mxu3 }
 0x20f   :  { %v479_v48 = vadd.f32 %v478_v40, %v365_v46 }
 0x211   :  { %v504_v50 = vmax.f32 %v479_v48, 0.0 }
 0x212   :  { %v484_v57 = vpop.f32.mrf.mxu0 }
 0x213   :  { %957 = vmatmul.msk.f32.gmra.mxu1 %vm517_vm2, %v504_v50 }
 0x216   :  { %v368_v54 = vpop.f32.mrf.mxu3 }
 0x217   :  { %v482_v55 = vadd.f32 %v481_v47, %v368_v54 }
 0x219   :  { %v505_v58 = vmax.f32 %v482_v55, 0.0 }
 0x21a   :  { %v487_v63 = vpop.f32.mrf.mxu0 }
 0x21b   :  { %958 = vmatmul.msk.f32.gmra.mxu1 %vm517_vm2, %v505_v58 }
 0x21e   :  { %v371_v60 = vpop.f32.mrf.mxu3 }
 0x21f   :  { %v485_v61 = vadd.f32 %v484_v57, %v371_v60 }
 0x221   :  { %v506_v62 = vmax.f32 %v485_v61, 0.0 }
 0x222   :  { %v490_v3 = vpop.f32.mrf.mxu0 }
 0x223   :  { %959 = vmatmul.msk.f32.gmra.mxu1 %vm517_vm2, %v506_v62 }
 0x226   :  { %v374_v0 = vpop.f32.mrf.mxu3 }
 0x227   :  { %v488_v1 = vadd.f32 %v487_v63, %v374_v0 }
 0x229   :  { %v507_v2 = vmax.f32 %v488_v1, 0.0 }
 0x22b   :  { %960 = vmatmul.msk.f32.gmra.mxu1 %vm517_vm2, %v507_v2 }
 0x22e   :  { %v377_v4 = vpop.f32.mrf.mxu3 }
 0x22f   :  { %v491_v5 = vadd.f32 %v490_v3, %v377_v4 }
 0x231   :  { %v508_v6 = vmax.f32 %v491_v5, 0.0 }
 0x233   :  { %961 = vmatmul.msk.f32.gmra.mxu1 %vm517_vm2, %v508_v6 }
 0x238   :  { %v583_v7 = vpop.f32.mrf.mxu1 }
 0x239   :  { %v631_v8 = vmax.f32 %v583_v7, 0.0 }
 0x23b   :  { %962 = vmatmul.msk.f32.vlgmr.msrb.gmra.mxu2 %vm517_vm2, %v631_v8  ;;  %v784_v8 = vld [vmem:[#allocation11] sm:$0xff] }
 0x240   :  { %v586_v9 = vpop.f32.mrf.mxu1 }
 0x241   :  { %v632_v10 = vmax.f32 %v586_v9, 0.0  ;;  %v808_v9 = vpop.permute.xlu0 %807 }
 0x243   :  { %963 = vmatmul.msk.f32.gmra.mxu2 %vm517_vm2, %v632_v10 }
 0x248   :  { %v589_v11 = vpop.f32.mrf.mxu1 }
 0x249   :  { %v633_v12 = vmax.f32 %v589_v11, 0.0 }
 0x24b   :  { %964 = vmatmul.msk.f32.gmra.mxu2 %vm517_vm2, %v633_v12 }
 0x250   :  { %v592_v13 = vpop.f32.mrf.mxu1 }
 0x251   :  { %v634_v14 = vmax.f32 %v592_v13, 0.0 }
 0x253   :  { %965 = vmatmul.msk.f32.gmra.mxu2 %vm517_vm2, %v634_v14 }
 0x258   :  { %v595_v15 = vpop.f32.mrf.mxu1 }
 0x259   :  { %v635_v16 = vmax.f32 %v595_v15, 0.0 }
 0x25b   :  { %966 = vmatmul.msk.f32.gmra.mxu2 %vm517_vm2, %v635_v16 }
 0x260   :  { %v598_v17 = vpop.f32.mrf.mxu1 }
 0x261   :  { %v636_v18 = vmax.f32 %v598_v17, 0.0 }
 0x263   :  { %967 = vmatmul.msk.f32.gmra.mxu2 %vm517_vm2, %v636_v18 }
 0x268   :  { %v601_v19 = vpop.f32.mrf.mxu1 }
 0x269   :  { %v637_v20 = vmax.f32 %v601_v19, 0.0 }
 0x26b   :  { %968 = vmatmul.msk.f32.gmra.mxu2 %vm517_vm2, %v637_v20 }
 0x270   :  { %v604_v21 = vpop.f32.mrf.mxu1 }
 0x271   :  { %v638_v22 = vmax.f32 %v604_v21, 0.0 }
 0x273   :  { %969 = vmatmul.msk.f32.gmra.mxu2 %vm517_vm2, %v638_v22 }
 0x278   :  { %v607_v23 = vpop.f32.mrf.mxu1 }
 0x279   :  { %v639_v24 = vmax.f32 %v607_v23, 0.0 }
 0x27b   :  { %970 = vmatmul.msk.f32.gmra.mxu2 %vm517_vm2, %v639_v24 }
 0x280   :  { %v610_v25 = vpop.f32.mrf.mxu1 }
 0x281   :  { %v640_v26 = vmax.f32 %v610_v25, 0.0 }
 0x283   :  { %971 = vmatmul.msk.f32.gmra.mxu2 %vm517_vm2, %v640_v26 }
 0x288   :  { %v613_v27 = vpop.f32.mrf.mxu1 }
 0x289   :  { %v641_v28 = vmax.f32 %v613_v27, 0.0 }
 0x28b   :  { %972 = vmatmul.msk.f32.gmra.mxu2 %vm517_vm2, %v641_v28 }
 0x290   :  { %v616_v29 = vpop.f32.mrf.mxu1 }
 0x291   :  { %v642_v30 = vmax.f32 %v616_v29, 0.0 }
 0x293   :  { %973 = vmatmul.msk.f32.gmra.mxu2 %vm517_vm2, %v642_v30 }
 0x298   :  { %v619_v31 = vpop.f32.mrf.mxu1 }
 0x299   :  { %v643_v32 = vmax.f32 %v619_v31, 0.0 }
 0x29b   :  { %974 = vmatmul.msk.f32.gmra.mxu2 %vm517_vm2, %v643_v32 }
 0x2a0   :  { %v622_v33 = vpop.f32.mrf.mxu1 }
 0x2a1   :  { %v644_v34 = vmax.f32 %v622_v33, 0.0 }
 0x2a3   :  { %975 = vmatmul.msk.f32.gmra.mxu2 %vm517_vm2, %v644_v34 }
 0x2a8   :  { %v625_v35 = vpop.f32.mrf.mxu1 }
 0x2a9   :  { %v645_v36 = vmax.f32 %v625_v35, 0.0 }
 0x2ab   :  { %976 = vmatmul.msk.f32.gmra.mxu2 %vm517_vm2, %v645_v36 }
 0x2b0   :  { %v628_v37 = vpop.f32.mrf.mxu1 }
 0x2b1   :  { %v646_v38 = vmax.f32 %v628_v37, 0.0 }
 0x2b3   :  { %977 = vmatmul.msk.f32.gmra.mxu2 %vm517_vm2, %v646_v38  ;;  %v1217_v38 = vmov 256.0  }
 0x2be   :  { %v720_v39 = vpop.f32.mrf.mxu2 }
 0x2bf   :  { %v768_v7 = vmax.f32 %v720_v39, 0.0 }
 0x2c6   :  { %v723_v40 = vpop.f32.mrf.mxu2 }
 0x2c7   :  { %v769_v6 = vmax.f32 %v723_v40, 0.0 }
 0x2ce   :  { %v726_v41 = vpop.f32.mrf.mxu2 }
 0x2cf   :  { %v770_v5 = vmax.f32 %v726_v41, 0.0 }
 0x2d6   :  { %v729_v42 = vpop.f32.mrf.mxu2 }
 0x2d7   :  { %v771_v4 = vmax.f32 %v729_v42, 0.0 }
 0x2de   :  { %v732_v43 = vpop.f32.mrf.mxu2 }
 0x2df   :  { %v772_v3 = vmax.f32 %v732_v43, 0.0 }
 0x2e6   :  { %v735_v44 = vpop.f32.mrf.mxu2 }
 0x2e7   :  { %v773_v2 = vmax.f32 %v735_v44, 0.0 }
 0x2ee   :  { %v738_v45 = vpop.f32.mrf.mxu2 }
 0x2ef   :  { %v774_v1 = vmax.f32 %v738_v45, 0.0 }
 0x2f6   :  { %v741_v46 = vpop.f32.mrf.mxu2 }
 0x2f7   :  { %v775_v0 = vmax.f32 %v741_v46, 0.0 }
 0x2fe   :  { %v744_v47 = vpop.f32.mrf.mxu2 }
 0x2ff   :  { %v776_v63 = vmax.f32 %v744_v47, 0.0 }
 0x306   :  { %v747_v48 = vpop.f32.mrf.mxu2 }
 0x307   :  { %v777_v62 = vmax.f32 %v747_v48, 0.0 }
 0x30e   :  { %v750_v49 = vpop.f32.mrf.mxu2 }
 0x30f   :  { %v778_v61 = vmax.f32 %v750_v49, 0.0 }
 0x316   :  { %v753_v50 = vpop.f32.mrf.mxu2 }
 0x317   :  { %v779_v60 = vmax.f32 %v753_v50, 0.0 }
 0x31e   :  { %v756_v51 = vpop.f32.mrf.mxu2 }
 0x31f   :  { %v780_v59 = vmax.f32 %v756_v51, 0.0 }
 0x326   :  { %v759_v52 = vpop.f32.mrf.mxu2 }
 0x327   :  { %v781_v58 = vmax.f32 %v759_v52, 0.0 }
 0x32e   :  { %v762_v53 = vpop.f32.mrf.mxu2 }
 0x32f   :  { %v782_v57 = vmax.f32 %v762_v53, 0.0 }
 0x336   :  { %v765_v54 = vpop.f32.mrf.mxu2 }
 0x337   :  { %v783_v55 = vmax.f32 %v765_v54, 0.0 }
 0x339   :  { %785 = vmatpush.msrb.mxu3 %v783_v55 }
 0x33b   :  { %786 = vmatpush.msrb.mxu3 %v782_v57 }
 0x33d   :  { %787 = vmatpush.msrb.mxu3 %v781_v58 }
 0x33f   :  { %788 = vmatpush.msrb.mxu3 %v780_v59 }
 0x341   :  { %789 = vmatpush.msrb.mxu3 %v779_v60 }
 0x343   :  { %790 = vmatpush.msrb.mxu3 %v778_v61 }
 0x345   :  { %791 = vmatpush.msrb.mxu3 %v777_v62 }
 0x347   :  { %792 = vmatpush.msrb.mxu3 %v776_v63 }
 0x349   :  { %793 = vmatpush.msrb.mxu3 %v775_v0 }
 0x34b   :  { %794 = vmatpush.msrb.mxu3 %v774_v1 }
 0x34d   :  { %795 = vmatpush.msrb.mxu3 %v773_v2 }
 0x34f   :  { %796 = vmatpush.msrb.mxu3 %v772_v3 }
 0x351   :  { %797 = vmatpush.msrb.mxu3 %v771_v4 }
 0x353   :  { %798 = vmatpush.msrb.mxu3 %v770_v5 }
 0x355   :  { %799 = vmatpush.msrb.mxu3 %v769_v6 }
 0x357   :  { %800 = vmatpush.msrb.mxu3 %v768_v7 }
 0x358   :  { %801 = vmatmul.f32.vlgmr.msrb.gmra.mxu3 %v784_v8 }
 0x3db   :  { %v802_v10 = vpop.f32.mrf.mxu3 }
 0x3dc   :  { %v818_v11 = vadd.f32 1e-20, %v802_v10  ;;  %v810_v12 = vmul.f32 %v808_v9, %v802_v10 }
 0x3de   :  { %996 = vlog2.f32 %v818_v11  ;;  %820 = vrot.lane.b32.xlu0 %v818_v11, %s1215_s10  ;;  %812 = vrot.lane.b32.xlu1 %v810_v12, %s1215_s10 }
 0x3e4   :  { %v997_v13 = vpop.eup %996 }
 0x3e5   :  { %v841_v14 = vmul.f32 0.6931472, %v997_v13 }
 0x3e7   :  { %843 = vrot.lane.b32.xlu1 %v841_v14, %s1215_s10 }
 0x450   :  { %v821_v15 = vpop.permute.xlu0 %820  ;;  %v813_v16 = vpop.permute.xlu1 %812 }
 0x451   :  { %998 = vrcp.f32 %v821_v15  ;;  %v815_v17 = vadd.f32 %v813_v16, %v802_v10  ;;  %v834_v21 = vand.u32 2147483648, %v821_v15  ;;  %v832_v23 = vand.u32 2147483647, %v821_v15 }
 0x452   :  { %vm828_vm4 = vweird.f32 %v821_v15  ;;  %1000 = vrcp.f32 %v1217_v38 }
 0x453   :  { %816 = vst.msk [vmem:[#allocation13] sm:$0xff] %vm144_vm0, %v815_v17  ;;  %v835_v25 = vor.u32 1.1754944e-38, %v834_v21  ;;  %vm833_vm6 = vcmp.eq.f32.partialorder %v832_v23, 8.507059e+37  ;;  %v817_v26 = vsub.f32 %v815_v17, %v802_v10  ;;  %v847_v31 = vmul.f32 0.5, %v815_v17 }
 0x454   :  { %882 = dma.vmem_to_hbm [thread:$0]  %s878_s7, 128, %s880_s29, [#allocation4]  }
 0x455   :  { %v848_v35 = vmul.f32 %v847_v31, %v815_v17 }
 0x457   :  { %v999_v18 = vpop.eup %998 }
 0x458   :  { %v824_v19 = vmul.f32 %v999_v18, %v821_v15  ;;  %vm829_vm3 = vweird.f32 %v999_v18  ;;  %v1001_v39 = vpop.eup %1000 }
 0x459   :  { %vm830_vm5 = vmor %vm828_vm4, %vm829_vm3  ;;  %v844_v33 = vpop.permute.xlu1 %843  ;;  %v861_v40 = vmul.f32 256.0, %v1001_v39  ;;  %vm865_vm7 = vweird.f32 %v1001_v39 }
 0x45a   :  { %v825_v20 = vsub.f32 1.0, %v824_v19 }
 0x45b   :  { %v862_v41 = vsub.f32 1.0, %v861_v40 }
 0x45c   :  { %v826_v22 = vmul.f32 %v999_v18, %v825_v20 }
 0x45d   :  { %v863_v45 = vmul.f32 %v1001_v39, %v862_v41 }
 0x45e   :  { %v827_v24 = vadd.f32 %v999_v18, %v826_v22 }
 0x45f   :  { %v864_v48 = vadd.f32 %v1001_v39, %v863_v45 }
 0x460   :  { %v831_v27 = vsel %vm830_vm5, %v999_v18, %v827_v24 }
 0x461   :  { %v836_v28 = vsel %vm833_vm6, %v835_v25, %v831_v27  ;;  %v866_v51 = vsel %vm865_vm7, %v1001_v39, %v864_v48 }
 0x462   :  { %v837_v29 = vmul.f32 %v836_v28, %v817_v26 }
 0x464   :  { %v838_v30 = vmul.f32 -0.5, %v837_v29 }
 0x466   :  { %v839_v32 = vmul.f32 %v838_v30, %v837_v29 }
 0x468   :  { %v846_v34 = vsub.f32 %v839_v32, %v844_v33 }
 0x46a   :  { %v849_v36 = vadd.f32 %v848_v35, %v846_v34 }
 0x46c   :  { %v850_v37 = vsel %vm144_vm0, %v849_v36, 0.0 }
 0x46d   :  { %851 = vadd.xlane.f32.xlu2 %v850_v37 }
 0x4e0   :  { %v852_v42 = vpop.xlane.xlu2 %851 }
 0x4e1   :  { %v853_v43 = vrot.slane %v852_v42, 4 }
 0x4e3   :  { %v854_v44 = vadd.f32 %v853_v43, %v852_v42 }
 0x4e5   :  { %v855_v46 = vrot.slane %v854_v44, 2 }
 0x4e7   :  { %v856_v47 = vadd.f32 %v855_v46, %v854_v44 }
 0x4e9   :  { %v857_v49 = vrot.slane %v856_v47, 1 }
 0x4eb   :  { %v858_v50 = vadd.f32 %v857_v49, %v856_v47 }
 0x4ed   :  { %978 = vpush %v858_v50 }
 0x4ee   :  { %980 = vpush %v866_v51 }
 0x51e   :  { %s979_s15 = spop %978 }
 0x51f   :  { %s981_s17 = spop %980 }
 0x520   :  { %s868_s18 = smul.f32 %s981_s17, %s979_s15 }
 0x522   :  { %v869_v52 = vstv %s868_s18 }
 0x523   :  { %871 = vst.msk [vmem:[#allocation14] sm:$0x1] %vm870_vm8, %v869_v52 }
 0x524   :  { %893 = dma.vmem_to_hbm [thread:$0]  %s889_s30, 16, %s891_s6, [#allocation15]  }
 0x525   :  { %1202 = dma.done.wait [#allocation4], 128  }
 0x526   :  { %1203 = vsyncadd [#allocation4], 4294967168 }
 0x527   :  { %1204 = dma.done.wait [#allocation15], 16  }
 0x528   :  { %1205 = vsyncadd [#allocation15], 4294967280 }
 0x529   :  { %902 = vsyncpa [#allocation3], 1 }
 0x52a   :  { %903 = vsyncpa [#allocation6], 1 }
 0x52b   :  { %904 = vsyncpa [#allocation9], 1 }
 0x52c   :  { %905 = vsyncpa [#allocation12], 1 }
 0x52d   :  { %906 = vsyncpa [#allocation4], 1 }
 0x52e   :  { %907 = vsyncpa [#allocation15], 1 }

</bundles_post_ra>
